<compile_context>
chip_gen: v6e
topology: v6e:2x2x1
jax: 0.10.0
libtpu: 0.0.40
codegen_flags: <defaults>
</compile_context>

<pallas_src>
import functools

import jax
import jax.numpy as jnp
from jax.experimental import pallas as pl
from jax.experimental.pallas import tpu as pltpu


# ---------------------------------------------------------------------------
# Kernels
# ---------------------------------------------------------------------------

def _fastpath_kernel(x_ref, w1_ref, b1_ref, gamma_ref, beta_ref, w2_ref, b2_ref,
                     out_ref):
    """Single-pass path: x fully VMEM-resident; reduce -> MLP -> gate (one HBM read of x)."""
    xf = x_ref[...].astype(jnp.float32)
    context = jnp.sum(xf, axis=0, keepdims=True)                          # [1, C]
    h = jnp.dot(context, w1_ref[...],
                preferred_element_type=jnp.float32) + b1_ref[...]         # [1, P]
    mu = jnp.mean(h, axis=1, keepdims=True)
    var = jnp.mean((h - mu) ** 2, axis=1, keepdims=True)
    h = (h - mu) * jax.lax.rsqrt(var + 1e-5) * gamma_ref[...] + beta_ref[...]
    h = jnp.maximum(h, 0.0)
    t = jnp.dot(h, w2_ref[...],
                preferred_element_type=jnp.float32) + b2_ref[...]         # [1, C]
    term = jax.nn.sigmoid(t).astype(out_ref.dtype)
    out_ref[...] = x_ref[...] * term


def _make_context_partial_kernel(n_rows, tile_rows, n_cols, tiles_per_split, need_mask):
    """Phase 0 (streaming): per-split partial context sum into an [8, C] output block."""
    groups = tile_rows // 8

    def kernel(x_ref, psum_ref):
        s = pl.program_id(0)        # split (sharded across TensorCores on v7x)
        i = pl.program_id(1)        # tile within the split (sequential reduction)

        @pl.when(i == 0)
        def _init():
            psum_ref[...] = jnp.zeros_like(psum_ref)

        # (tile_rows, C) -> (tile_rows//8, 8, C) is layout-preserving (sublane groups of
        # 8); the axis-0 sum is then pure vreg adds and the single cross-sublane reduce
        # of the [8, C] partials happens once, outside the kernel.
        x = x_ref[...].astype(jnp.float32).reshape(groups, 8, n_cols)
        if need_mask:
            # Mask rows past the true N: the tail of the last tile and (for an uneven
            # split) the clamped/duplicated trailing blocks, whose nominal global row
            # index is >= N, so nothing is double counted.
            tile_idx = s * tiles_per_split + i
            row_in_tile = (
                jax.lax.broadcasted_iota(jnp.int32, (groups, 8, 1), 0) * 8
                + jax.lax.broadcasted_iota(jnp.int32, (groups, 8, 1), 1))
            valid = (tile_idx * tile_rows + row_in_tile) < n_rows
            x = jnp.where(valid, x, 0.0)
        psum_ref[...] += jnp.sum(x, axis=0)

    return kernel


def _gate_kernel(x_ref, term_ref, out_ref):
    """Phase 1 (streaming): out = x * term. term is pre-cast to x.dtype; garbage rows of
    a ragged tail tile are discarded by Pallas on the OOB store."""
    out_ref[...] = x_ref[...] * term_ref[...]


# ---------------------------------------------------------------------------
# Wrapper
# ---------------------------------------------------------------------------

_HEADROOM_BYTES = 6 * 1024 * 1024        # internal scratch, [8,C] partials, term, ...
_FASTPATH_HEADROOM = 8 * 1024 * 1024
_MAX_REDUCE_TILE_ROWS = 2048             # phase 0 (input-only double buffering)
_MAX_GATE_TILE_ROWS = 1024               # phase 1 (in + out double buffering)


def _vmem_limit_bytes():
    cap = 64 * 1024 * 1024
    try:
        info = pltpu.get_tpu_info()
        cap = int(getattr(info, "vmem_capacity_bytes", cap) or cap)
    except Exception:
        pass
    # 128 MiB parts (v5e/v6e) -> ~96 MiB scoped limit; 64 MiB parts (v7x) -> ~48 MiB.
    return max(32 * 1024 * 1024, min(cap * 3 // 4, 96 * 1024 * 1024))


def _row_align(itemsize):
    # Native sublane packing: 8 rows for 32-bit, 16 for 16-bit, 32 for 8-bit dtypes.
    return 8 * max(1, 4 // itemsize)


def _choose_tile_rows(n, buffered_bytes_per_row, row_align, max_rows, budget):
    budget_rows = max(row_align, budget // max(buffered_bytes_per_row, 1))
    tn = min(budget_rows, max_rows, max(n, row_align))
    return int(max(row_align, (tn // row_align) * row_align))


def _mlp_term(context, p):
    """Bottleneck MLP on the [1, C] context (tiny M=1 work; plain JAX/XLA)."""
    h = context @ p["w1"] + p["b1"]
    mu = jnp.mean(h, axis=-1, keepdims=True)
    var = jnp.mean((h - mu) ** 2, axis=-1, keepdims=True)
    h = (h - mu) * jax.lax.rsqrt(var + 1e-5) * p["gamma"] + p["beta"]
    h = jnp.maximum(h, 0.0)
    return jax.nn.sigmoid(h @ p["w2"] + p["b2"])


@functools.partial(jax.jit, static_argnames=("max_tile_rows", "force_stream"))
def global_context_block(x, params, *, max_tile_rows=None, force_stream=False):
    """x: [N, C]. Returns x * sigmoid(MLP(sum(x, 0))) (== PyTorch forward)."""
    n, c = x.shape
    itemsize = jnp.dtype(x.dtype).itemsize
    vmem_limit = _vmem_limit_bytes()
    align = _row_align(itemsize)

    # ---------------- Fast path: x fits in VMEM -> single pallas_call -------------
    param_bytes = sum(int(v.size) * jnp.dtype(v.dtype).itemsize
                      for v in jax.tree_util.tree_leaves(params))
    fast_bytes = n * c * (2 * itemsize + 4) + param_bytes   # x + out + f32 upcast of x
    if (not force_stream) and fast_bytes + _FASTPATH_HEADROOM <= vmem_limit:
        return pl.pallas_call(
            _fastpath_kernel,
            out_shape=jax.ShapeDtypeStruct((n, c), x.dtype),
            compiler_params=pltpu.CompilerParams(vmem_limit_bytes=vmem_limit),
        )(x, params["w1"], params["b1"], params["gamma"], params["beta"],
          params["w2"], params["b2"])

    budget = vmem_limit - _HEADROOM_BYTES
    max_reduce_rows = _MAX_REDUCE_TILE_ROWS if max_tile_rows is None else max_tile_rows
    max_gate_rows = _MAX_GATE_TILE_ROWS if max_tile_rows is None else max_tile_rows

    # ---------------- Phase 0: streaming partial context sums ---------------------
    # Only the input tile is double-buffered (the MLP weights live outside this kernel),
    # so phase 0 can use ~2x the rows of phase 1.
    tn0 = _choose_tile_rows(n, 2 * c * itemsize, align, max_reduce_rows, budget)
    n_tiles0 = pl.cdiv(n, tn0)
    n_splits = 2 if n_tiles0 >= 2 else 1        # v7x: one split per TensorCore
    tps = pl.cdiv(n_tiles0, n_splits)
    if n_splits * tps > n_tiles0:
        # Uneven split: clamp the trailing block index (no OOB DMA); its rows are fully
        # masked in-kernel since their nominal global row index is >= N.
        x_map0 = lambda s, i: (jnp.minimum(s * tps + i, n_tiles0 - 1), 0)
    else:
        x_map0 = lambda s, i: (s * tps + i, 0)
    need_mask = (n_splits * tps * tn0) != n

    psum = pl.pallas_call(
        _make_context_partial_kernel(n, tn0, c, tps, need_mask),
        out_shape=jax.ShapeDtypeStruct((n_splits * 8, c), jnp.float32),
        grid=(n_splits, tps),
        in_specs=[pl.BlockSpec((tn0, c), x_map0)],
        out_specs=pl.BlockSpec((8, c), lambda s, i: (s, 0)),
        compiler_params=pltpu.CompilerParams(
            dimension_semantics=("parallel", "arbitrary"),
            vmem_limit_bytes=vmem_limit),
    )(x)

    context = jnp.sum(psum, axis=0, keepdims=True)             # [1, C] f32
    term = _mlp_term(context, params).astype(x.dtype)          # one-time cast (bf16 gate)

    # ---------------- Phase 1: streaming channel-mul gating -----------------------
    tn1 = _choose_tile_rows(n, 4 * c * itemsize, align, max_gate_rows, budget)
    n_tiles1 = pl.cdiv(n, tn1)
    out = pl.pallas_call(
        _gate_kernel,
        out_shape=jax.ShapeDtypeStruct((n, c), x.dtype),
        grid=(n_tiles1,),
        in_specs=[
            pl.BlockSpec((tn1, c), lambda i: (i, 0)),
            # term is [1, C] with a constant index; its footprint is negligible.
            pl.BlockSpec((1, c), lambda i: (0, 0)),
        ],
        out_specs=pl.BlockSpec((tn1, c), lambda i: (i, 0)),
        compiler_params=pltpu.CompilerParams(
            dimension_semantics=("parallel",),
            vmem_limit_bytes=vmem_limit),
    )(x, term)
    return out


# ---------------------------------------------------------------------------
# Parameters & pure-JAX reference (matches the PyTorch forward exactly)
# ---------------------------------------------------------------------------

def init_params(key, inplanes, ratio):
    """nn.Linear-style init (uniform +/- 1/sqrt(fan_in)). Weights stored [in, out]."""
    planes = int(inplanes * ratio)
    ks = jax.random.split(key, 6)

    def lin(kw, kb, fan_in, fan_out):
        bound = 1.0 / jnp.sqrt(float(fan_in))
        w = jax.random.uniform(kw, (fan_in, fan_out), jnp.float32, -bound, bound)
        b = jax.random.uniform(kb, (1, fan_out), jnp.float32, -bound, bound)
        return w, b

    # conv_mask params exist in the module, but softmax over the size-1 axis makes them
    # irrelevant to the output; the kernels drop them (the reference keeps them).
    w_mask, b_mask = lin(ks[0], ks[1], inplanes, 1)
    w1, b1 = lin(ks[2], ks[3], inplanes, planes)
    w2, b2 = lin(ks[4], ks[5], planes, inplanes)
    return {
        "w_mask": w_mask.T,                                  # [1, C]
        "b_mask": b_mask.reshape(1, 1),                      # [1, 1]
        "w1": w1, "b1": b1,                                  # [C, P], [1, P]
        "gamma": jnp.ones((1, planes), jnp.float32),         # LayerNorm affine defaults
        "beta": jnp.zeros((1, planes), jnp.float32),
        "w2": w2, "b2": b2,                                  # [P, C], [1, C]
    }


def _reference(x, p):
    """Full PyTorch forward, including the (degenerate) attention-mask path."""
    xf = x.astype(jnp.float32)
    logits = xf @ p["w_mask"].T + p["b_mask"][0, 0]          # [N, 1]
    mask = jax.nn.softmax(logits, axis=1)                    # identically 1.0
    context = jnp.sum(mask * xf, axis=0, keepdims=True)      # [1, C]
    h = context @ p["w1"] + p["b1"]
    mu = jnp.mean(h, axis=-1, keepdims=True)
    var = jnp.mean((h - mu) ** 2, axis=-1, keepdims=True)
    h = (h - mu) * jax.lax.rsqrt(var + 1e-5) * p["gamma"] + p["beta"]
    h = jnp.maximum(h, 0.0)
    t = h @ p["w2"] + p["b2"]
    return (xf * jax.nn.sigmoid(t)).astype(x.dtype)


# ---------------------------------------------------------------------------
# Demo
# ---------------------------------------------------------------------------

if __name__ == "__main__":
    key = jax.random.PRNGKey(0)
    k1, k2, k3, kp = jax.random.split(key, 4)

    inplanes, ratio = 128, 0.25            # C=128 (lane-dense), planes=32
    params = init_params(kp, inplanes, ratio)

    # Case 1: small f32 input -> single-pass VMEM-resident fast path.
    x1 = jax.random.normal(k1, (256, inplanes), jnp.float32)
    out1 = jax.block_until_ready(global_context_block(x1, params))
    ref1 = _reference(x1, params)
    assert out1.shape == x1.shape
    assert jnp.allclose(out1, ref1, atol=5e-5, rtol=5e-5), "fast path mismatch"

    # Case 2: ragged-N f32, forced streaming path — exercises the in-kernel tail mask,
    # the uneven two-way split (clamped index_map), and OOB-store masking in the gate.
    x2 = jax.random.normal(k2, (400, inplanes), jnp.float32)
    out2 = jax.block_until_ready(
        global_context_block(x2, params, max_tile_rows=64, force_stream=True))
    ref2 = _reference(x2, params)
    assert jnp.allclose(out2, ref2, atol=5e-5, rtol=5e-5), "streaming f32 mismatch"

    # Case 3: bf16 streaming path — checks 16-row sublane alignment and bf16 gating.
    x3 = jax.random.normal(k3, (333, inplanes), jnp.float32).astype(jnp.bfloat16)
    out3 = jax.block_until_ready(
        global_context_block(x3, params, max_tile_rows=64, force_stream=True))
    ref3 = _reference(x3, params)
    assert jnp.allclose(out3.astype(jnp.float32), ref3.astype(jnp.float32),
                        atol=5e-2, rtol=5e-2), "streaming bf16 mismatch"

    print("KERNEL_OK")
</pallas_src>

<mosaic_0001>
module attributes {stable_mosaic.version = 11 : i64} {
  func.func @_fastpath_kernel(%arg0: memref<256x128xf32, #tpu.memory_space<vmem>>, %arg1: memref<128x32xf32, #tpu.memory_space<vmem>>, %arg2: memref<1x32xf32, #tpu.memory_space<vmem>>, %arg3: memref<1x32xf32, #tpu.memory_space<vmem>>, %arg4: memref<1x32xf32, #tpu.memory_space<vmem>>, %arg5: memref<32x128xf32, #tpu.memory_space<vmem>>, %arg6: memref<1x128xf32, #tpu.memory_space<vmem>>, %arg7: memref<256x128xf32, #tpu.memory_space<vmem>>) attributes {dimension_semantics = [], scalar_prefetch = 0 : i64, scratch_operands = 0 : i64, tpu.core_type = #tpu.core_type<tc>} {
    %c0 = arith.constant 0 : index
    %c0_0 = arith.constant 0 : index
    %0 = vector.load %arg0[%c0, %c0_0] : memref<256x128xf32, #tpu.memory_space<vmem>>, vector<256x128xf32>
    %cst = arith.constant dense<0.000000e+00> : vector<128xf32>
    %1 = vector.multi_reduction <add>, %0, %cst [0] : vector<256x128xf32> to vector<128xf32>
    %2 = vector.shape_cast %1 : vector<128xf32> to vector<1x128xf32>
    %c0_1 = arith.constant 0 : index
    %c0_2 = arith.constant 0 : index
    %3 = vector.load %arg1[%c0_1, %c0_2] : memref<128x32xf32, #tpu.memory_space<vmem>>, vector<128x32xf32>
    %cst_3 = arith.constant dense<0.000000e+00> : vector<1x32xf32>
    %4 = tpu.matmul %2, %3, %cst_3 {dimension_numbers = #tpu.dot_dimension_numbers<[1], [0], [0], [1], [0, 0, 1, 1], [], []>} : vector<1x128xf32>, vector<128x32xf32>, vector<1x32xf32> -> vector<1x32xf32>
    %c0_4 = arith.constant 0 : index
    %c0_5 = arith.constant 0 : index
    %5 = vector.load %arg2[%c0_4, %c0_5] : memref<1x32xf32, #tpu.memory_space<vmem>>, vector<1x32xf32>
    %6 = arith.addf %4, %5 : vector<1x32xf32>
    %cst_6 = arith.constant dense<0.000000e+00> : vector<1xf32>
    %7 = vector.multi_reduction <add>, %6, %cst_6 [1] : vector<1x32xf32> to vector<1xf32>
    %8 = vector.shape_cast %7 : vector<1xf32> to vector<1x1xf32>
    %cst_7 = arith.constant 3.200000e+01 : f32
    %9 = vector.broadcast %cst_7 : f32 to vector<1x1xf32>
    %10 = arith.divf %8, %9 : vector<1x1xf32>
    %11 = vector.broadcast %10 : vector<1x1xf32> to vector<1x32xf32>
    %12 = arith.subf %6, %11 : vector<1x32xf32>
    %13 = arith.mulf %12, %12 : vector<1x32xf32>
    %cst_8 = arith.constant dense<0.000000e+00> : vector<1xf32>
    %14 = vector.multi_reduction <add>, %13, %cst_8 [1] : vector<1x32xf32> to vector<1xf32>
    %15 = vector.shape_cast %14 : vector<1xf32> to vector<1x1xf32>
    %cst_9 = arith.constant 3.200000e+01 : f32
    %16 = vector.broadcast %cst_9 : f32 to vector<1x1xf32>
    %17 = arith.divf %15, %16 : vector<1x1xf32>
    %18 = vector.broadcast %10 : vector<1x1xf32> to vector<1x32xf32>
    %19 = arith.subf %6, %18 : vector<1x32xf32>
    %cst_10 = arith.constant 9.99999974E-6 : f32
    %20 = vector.broadcast %cst_10 : f32 to vector<1x1xf32>
    %21 = arith.addf %17, %20 : vector<1x1xf32>
    %22 = math.rsqrt %21 : vector<1x1xf32>
    %23 = vector.broadcast %22 : vector<1x1xf32> to vector<1x32xf32>
    %24 = arith.mulf %19, %23 : vector<1x32xf32>
    %c0_11 = arith.constant 0 : index
    %c0_12 = arith.constant 0 : index
    %25 = vector.load %arg3[%c0_11, %c0_12] : memref<1x32xf32, #tpu.memory_space<vmem>>, vector<1x32xf32>
    %26 = arith.mulf %24, %25 : vector<1x32xf32>
    %c0_13 = arith.constant 0 : index
    %c0_14 = arith.constant 0 : index
    %27 = vector.load %arg4[%c0_13, %c0_14] : memref<1x32xf32, #tpu.memory_space<vmem>>, vector<1x32xf32>
    %28 = arith.addf %26, %27 : vector<1x32xf32>
    %cst_15 = arith.constant 0.000000e+00 : f32
    %29 = vector.broadcast %cst_15 : f32 to vector<1x32xf32>
    %30 = arith.maximumf %28, %29 : vector<1x32xf32>
    %c0_16 = arith.constant 0 : index
    %c0_17 = arith.constant 0 : index
    %31 = vector.load %arg5[%c0_16, %c0_17] : memref<32x128xf32, #tpu.memory_space<vmem>>, vector<32x128xf32>
    %cst_18 = arith.constant dense<0.000000e+00> : vector<1x128xf32>
    %32 = tpu.matmul %30, %31, %cst_18 {dimension_numbers = #tpu.dot_dimension_numbers<[1], [0], [0], [1], [0, 0, 1, 1], [], []>} : vector<1x32xf32>, vector<32x128xf32>, vector<1x128xf32> -> vector<1x128xf32>
    %c0_19 = arith.constant 0 : index
    %c0_20 = arith.constant 0 : index
    %33 = vector.load %arg6[%c0_19, %c0_20] : memref<1x128xf32, #tpu.memory_space<vmem>>, vector<1x128xf32>
    %34 = arith.addf %32, %33 : vector<1x128xf32>
    %35 = arith.negf %34 : vector<1x128xf32>
    %36 = math.exp %35 : vector<1x128xf32>
    %cst_21 = arith.constant 1.000000e+00 : f32
    %37 = vector.broadcast %cst_21 : f32 to vector<1x128xf32>
    %38 = arith.addf %37, %36 : vector<1x128xf32>
    %39 = arith.divf %37, %38 : vector<1x128xf32>
    %c0_22 = arith.constant 0 : index
    %c0_23 = arith.constant 0 : index
    %40 = vector.load %arg0[%c0_22, %c0_23] : memref<256x128xf32, #tpu.memory_space<vmem>>, vector<256x128xf32>
    %41 = vector.broadcast %39 : vector<1x128xf32> to vector<256x128xf32>
    %42 = arith.mulf %40, %41 : vector<256x128xf32>
    %c0_24 = arith.constant 0 : index
    %c0_25 = arith.constant 0 : index
    %43 = vector.load %arg7[%c0_24, %c0_25] : memref<256x128xf32, #tpu.memory_space<vmem>>, vector<256x128xf32>
    tpu.vector_store %arg7[%c0_24, %c0_25], %42 {strides = array<i32>} : memref<256x128xf32, #tpu.memory_space<vmem>>, vector<256x128xf32>,
    return
  }
}

</mosaic_0001>

<bundles_post_ra>
// kernel: global_context_block.1
= control target key start
LH: loop header
LB: loop body
LE: loop exit
PB: predicated region body
PF: predicated region fallthrough
CT: control target
= control target key end

     0   :  { %12 = vsyncpa [#allocation3], 0  ;;  %s793_s0 = inlined_call_operand.hbm [shape: f32[256,128], index: 0, kind: input, shape index: {}]   ;;  %s794_s1 = inlined_call_operand.vmem [shape: f32[128,32], index: 1, kind: input, shape index: {}]   ;;  %s795_s2 = inlined_call_operand.vmem [shape: f32[1,32], index: 2, kind: input, shape index: {}]   ;;  %s796_s3 = inlined_call_operand.vmem [shape: f32[1,32], index: 3, kind: input, shape index: {}]   ;;  %s797_s4 = inlined_call_operand.vmem [shape: f32[1,32], index: 4, kind: input, shape index: {}]   ;;  %s798_s5 = inlined_call_operand.vmem [shape: f32[32,128], index: 5, kind: input, shape index: {}]   ;;  %s799_s6 = inlined_call_operand.vmem [shape: f32[1,128], index: 6, kind: input, shape index: {}]   ;;  %s800_s7 = inlined_call_operand.hbm [shape: f32[256,128], index: 7, kind: output, shape index: {}]  }
   0x1   :  { %13 = vsyncpa [#allocation4], 0  ;;  %s513_s24 = smov [#allocation2]  }
   0x2   :  { %s19_s25 = sshll.u32 %s513_s24, 4  ;;  %s20_s25 = int_to_ptr.vmem [resolvable:$true] %s19_s25 }
   0x3   :  { %s477_s26 = scalar_lea.vmem %s20_s25, 4096  ;;  %p482_p1 = scmp.lt.s32.totalorder %s20_s25, %s20_s25 }
   0x4   :  { %p478_p0 = scmp.ne.s32.totalorder %s20_s25, %s477_s26  ;;  %p483_p2 = scmp.lt.s32.totalorder %s477_s26, %s477_s26 }
   0x6   :  { %p484_p3 = por %p483_p2, %p482_p1 }
   0x8   :  { %p485_p4 = pnand %p484_p3, %p478_p0 }
   0xa   :  { %488 = shalt.err (!%p485_p4)
}
   0xb   :  { %s514_s27 = smov 128   ;;  %s515_s28 = smov 8  }
   0xc   :  { %25 = dma.hbm_to_vmem [thread:$0]  %s793_s0, 4096, %s20_s25, [#allocation3], %s514_s27, %s514_s27, %s515_s28  }
   0xd   :  { %509 = dma.done.wait [#allocation3], 4096  }
   0xe   :  { %510 = vsyncadd [#allocation3], 4294963200  ;;  %v516_v0 = vmov 0.0   ;;  %vm517_vm0 = vmmov 0   ;;  %v125_v1 = vld [vmem:[%s794_s1 + $0x78] sm:$0xff]  ;;  %v124_v2 = vld [vmem:[%s794_s1 + $0x70] sm:$0xff] }
   0xf   :  { %411 = vmatprep.subr.mxu0 %v516_v0  ;;  %443 = vmatprep.mubr.msk.f32.mxu0 %vm517_vm0, %v516_v0  ;;  %v123_v3 = vld [vmem:[%s794_s1 + $0x68] sm:$0xff]  ;;  %v122_v4 = vld [vmem:[%s794_s1 + $0x60] sm:$0xff]  ;;  %v121_v7 = vld [vmem:[%s794_s1 + $0x58] sm:$0xff]  ;;  %vm197_vm1 = vcmask 253952   ;;  %vm222_vm2 = vcmask 261120  }
  0x10   :  { %446 = vmatprep.subr.mxu1 %v516_v0  ;;  %454 = vmatprep.mubr.msk.f32.mxu1 %vm517_vm0, %v516_v0  ;;  %v583_v5 = vld [vmem:[#allocation2] sm:$0xff]  ;;  %v585_v6 = vld [vmem:[#allocation2 + $0x8] sm:$0xff]  ;;  %v591_v8 = vld [vmem:[#allocation2 + $0x10] sm:$0xff] }
  0x11   :  { %412 = vmatpush3.msra.mxu0 %v125_v1  ;;  %v73_v9 = vadd.f32 %v585_v6, %v583_v5  ;;  %v595_v10 = vld [vmem:[#allocation2 + $0x18] sm:$0xff]  ;;  %v120_v11 = vld [vmem:[%s794_s1 + $0x50] sm:$0xff]  ;;  %v602_v13 = vld [vmem:[#allocation2 + $0x20] sm:$0xff] }
  0x12   :  { %413 = vmatprep.subr.mxu0 %v516_v0  ;;  %v119_v14 = vld [vmem:[%s794_s1 + $0x48] sm:$0xff]  ;;  %v118_v17 = vld [vmem:[%s794_s1 + $0x40] sm:$0xff]  ;;  %v616_v19 = vld [vmem:[#allocation2 + $0x30] sm:$0xff] }
  0x13   :  { %414 = vmatpush3.msra.mxu0 %v124_v2  ;;  %v74_v12 = vadd.f32 %v73_v9, %v591_v8  ;;  %v609_v16 = vld [vmem:[#allocation2 + $0x28] sm:$0xff]  ;;  %v117_v20 = vld [vmem:[%s794_s1 + $0x38] sm:$0xff]  ;;  %v116_v23 = vld [vmem:[%s794_s1 + $0x30] sm:$0xff] }
  0x14   :  { %415 = vmatprep.subr.mxu0 %v516_v0  ;;  %v623_v22 = vld [vmem:[#allocation2 + $0x38] sm:$0xff]  ;;  %v630_v25 = vld [vmem:[#allocation2 + $0x40] sm:$0xff]  ;;  %v115_v26 = vld [vmem:[%s794_s1 + $0x28] sm:$0xff] }
  0x15   :  { %416 = vmatpush3.msra.mxu0 %v123_v3  ;;  %v75_v15 = vadd.f32 %v74_v12, %v595_v10  ;;  %v637_v28 = vld [vmem:[#allocation2 + $0x48] sm:$0xff]  ;;  %v114_v29 = vld [vmem:[%s794_s1 + $0x20] sm:$0xff]  ;;  %v644_v31 = vld [vmem:[#allocation2 + $0x50] sm:$0xff] }
  0x16   :  { %417 = vmatprep.subr.mxu0 %v516_v0  ;;  %v113_v32 = vld [vmem:[%s794_s1 + $0x18] sm:$0xff]  ;;  %v112_v35 = vld [vmem:[%s794_s1 + $0x10] sm:$0xff]  ;;  %v658_v37 = vld [vmem:[#allocation2 + $0x60] sm:$0xff] }
  0x17   :  { %418 = vmatpush3.msra.mxu0 %v122_v4  ;;  %v76_v18 = vadd.f32 %v75_v15, %v602_v13  ;;  %v651_v34 = vld [vmem:[#allocation2 + $0x58] sm:$0xff]  ;;  %v111_v38 = vld [vmem:[%s794_s1 + $0x8] sm:$0xff]  ;;  %v110_v41 = vld [vmem:[%s794_s1] sm:$0xff] }
  0x18   :  { %419 = vmatprep.subr.mxu0 %v516_v0  ;;  %v665_v40 = vld [vmem:[#allocation2 + $0x68] sm:$0xff]  ;;  %v672_v43 = vld [vmem:[#allocation2 + $0x70] sm:$0xff]  ;;  %v676_v45 = vld [vmem:[#allocation2 + $0x78] sm:$0xff] }
  0x19   :  { %420 = vmatpush3.msra.mxu0 %v121_v7  ;;  %v77_v21 = vadd.f32 %v76_v18, %v609_v16  ;;  %v679_v47 = vld [vmem:[#allocation2 + $0x80] sm:$0xff]  ;;  %v682_v49 = vld [vmem:[#allocation2 + $0x88] sm:$0xff]  ;;  %v685_v51 = vld [vmem:[#allocation2 + $0x90] sm:$0xff] }
  0x1a   :  { %421 = vmatprep.subr.mxu0 %v516_v0  ;;  %v688_v53 = vld [vmem:[#allocation2 + $0x98] sm:$0xff]  ;;  %v691_v55 = vld [vmem:[#allocation2 + $0xa0] sm:$0xff]  ;;  %v694_v57 = vld [vmem:[#allocation2 + $0xa8] sm:$0xff] }
  0x1b   :  { %422 = vmatpush3.msra.mxu0 %v120_v11  ;;  %v78_v24 = vadd.f32 %v77_v21, %v616_v19  ;;  %v697_v59 = vld [vmem:[#allocation2 + $0xb0] sm:$0xff]  ;;  %v700_v61 = vld [vmem:[#allocation2 + $0xb8] sm:$0xff]  ;;  %v703_v63 = vld [vmem:[#allocation2 + $0xc0] sm:$0xff] }
  0x1c   :  { %423 = vmatprep.subr.mxu0 %v516_v0  ;;  %v706_v2 = vld [vmem:[#allocation2 + $0xc8] sm:$0xff]  ;;  %v709_v4 = vld [vmem:[#allocation2 + $0xd0] sm:$0xff]  ;;  %v712_v9 = vld [vmem:[#allocation2 + $0xd8] sm:$0xff] }
  0x1d   :  { %424 = vmatpush3.msra.mxu0 %v119_v14  ;;  %v79_v27 = vadd.f32 %v78_v24, %v623_v22  ;;  %v715_v12 = vld [vmem:[#allocation2 + $0xe0] sm:$0xff]  ;;  %v718_v15 = vld [vmem:[#allocation2 + $0xe8] sm:$0xff]  ;;  %v721_v18 = vld [vmem:[#allocation2 + $0xf0] sm:$0xff] }
  0x1e   :  { %425 = vmatprep.subr.mxu0 %v516_v0  ;;  %v724_v21 = vld [vmem:[#allocation2 + $0xf8] sm:$0xff] }
  0x1f   :  { %426 = vmatpush3.msra.mxu0 %v118_v17  ;;  %v80_v30 = vadd.f32 %v79_v27, %v630_v25 }
  0x20   :  { %427 = vmatprep.subr.mxu0 %v516_v0 }
  0x21   :  { %428 = vmatpush3.msra.mxu0 %v117_v20  ;;  %v81_v33 = vadd.f32 %v80_v30, %v637_v28 }
  0x22   :  { %429 = vmatprep.subr.mxu0 %v516_v0 }
  0x23   :  { %430 = vmatpush3.msra.mxu0 %v116_v23  ;;  %v82_v36 = vadd.f32 %v81_v33, %v644_v31 }
  0x24   :  { %431 = vmatprep.subr.mxu0 %v516_v0 }
  0x25   :  { %432 = vmatpush3.msra.mxu0 %v115_v26  ;;  %v83_v39 = vadd.f32 %v82_v36, %v651_v34 }
  0x26   :  { %433 = vmatprep.subr.mxu0 %v516_v0 }
  0x27   :  { %434 = vmatpush3.msra.mxu0 %v114_v29  ;;  %v84_v42 = vadd.f32 %v83_v39, %v658_v37 }
  0x28   :  { %435 = vmatprep.subr.mxu0 %v516_v0 }
  0x29   :  { %436 = vmatpush3.msra.mxu0 %v113_v32  ;;  %v85_v44 = vadd.f32 %v84_v42, %v665_v40 }
  0x2a   :  { %437 = vmatprep.subr.mxu0 %v516_v0 }
  0x2b   :  { %438 = vmatpush3.msra.mxu0 %v112_v35  ;;  %v86_v46 = vadd.f32 %v85_v44, %v672_v43  ;;  %v126_v35 = vld [vmem:[%s795_s2] sm:$0x1] }
  0x2c   :  { %439 = vmatprep.subr.mxu0 %v516_v0 }
  0x2d   :  { %440 = vmatpush3.msra.mxu0 %v111_v38  ;;  %v87_v48 = vadd.f32 %v86_v46, %v676_v45 }
  0x2e   :  { %441 = vmatprep.subr.mxu0 %v516_v0 }
  0x2f   :  { %442 = vmatpush3.msra.mxu0 %v110_v41  ;;  %v88_v50 = vadd.f32 %v87_v48, %v679_v47 }
  0x31   :  { %v89_v52 = vadd.f32 %v88_v50, %v682_v49 }
  0x33   :  { %v90_v54 = vadd.f32 %v89_v52, %v685_v51  ;;  %v220_v52 = vld [vmem:[%s798_s5 + $0x18] sm:$0xff] }
  0x34   :  { %447 = vmatpush3.msra.mxu1 %v220_v52 }
  0x35   :  { %v91_v56 = vadd.f32 %v90_v54, %v688_v53  ;;  %v219_v54 = vld [vmem:[%s798_s5 + $0x10] sm:$0xff]  ;;  %448 = vmatprep.subr.mxu1 %v516_v0 }
  0x36   :  { %449 = vmatpush3.msra.mxu1 %v219_v54 }
  0x37   :  { %v92_v58 = vadd.f32 %v91_v56, %v691_v55  ;;  %v218_v56 = vld [vmem:[%s798_s5 + $0x8] sm:$0xff]  ;;  %450 = vmatprep.subr.mxu1 %v516_v0 }
  0x38   :  { %451 = vmatpush3.msra.mxu1 %v218_v56 }
  0x39   :  { %v93_v60 = vadd.f32 %v92_v58, %v694_v57  ;;  %v217_v58 = vld [vmem:[%s798_s5] sm:$0xff]  ;;  %452 = vmatprep.subr.mxu1 %v516_v0 }
  0x3a   :  { %453 = vmatpush3.msra.mxu1 %v217_v58  ;;  %v221_v0 = vld [vmem:[%s799_s6] sm:$0x1] }
  0x3b   :  { %v94_v62 = vadd.f32 %v93_v60, %v697_v59 }
  0x3d   :  { %v95_v1 = vadd.f32 %v94_v62, %v700_v61 }
  0x3f   :  { %v96_v3 = vadd.f32 %v95_v1, %v703_v63 }
  0x41   :  { %v97_v7 = vadd.f32 %v96_v3, %v706_v2 }
  0x43   :  { %v98_v11 = vadd.f32 %v97_v7, %v709_v4  ;;  %v212_v7 = vld [vmem:[%s796_s3] sm:$0x1]  ;;  %s518_s3 = smov [#allocation5]  }
  0x45   :  { %v99_v14 = vadd.f32 %v98_v11, %v712_v9 }
  0x47   :  { %v100_v17 = vadd.f32 %v99_v14, %v715_v12  ;;  %v214_v14 = vld [vmem:[%s797_s4] sm:$0x1]  ;;  %s375_s4 = sshll.u32 %s518_s3, 4  ;;  %s376_s4 = int_to_ptr.vmem [resolvable:$true] %s375_s4 }
  0x48   :  { %s489_s6 = scalar_lea.vmem %s376_s4, 4096  ;;  %p494_p6 = scmp.lt.s32.totalorder %s376_s4, %s376_s4 }
  0x49   :  { %v101_v20 = vadd.f32 %v100_v17, %v718_v15  ;;  %p490_p5 = scmp.ne.s32.totalorder %s376_s4, %s489_s6  ;;  %p495_p7 = scmp.lt.s32.totalorder %s489_s6, %s489_s6 }
  0x4b   :  { %v102_v23 = vadd.f32 %v101_v20, %v721_v18  ;;  %p496_p8 = por %p495_p7, %p494_p6 }
  0x4d   :  { %v103_v24 = vadd.f32 %v102_v23, %v724_v21  ;;  %p497_p9 = pnand %p496_p8, %p490_p5 }
  0x4f   :  { %v104_v26 = vrot.slane %v103_v24, 4 }
  0x51   :  { %v105_v27 = vadd.f32 %v104_v26, %v103_v24 }
  0x53   :  { %v106_v29 = vrot.slane %v105_v27, 2 }
  0x55   :  { %v107_v30 = vadd.f32 %v106_v29, %v105_v27 }
  0x57   :  { %v108_v32 = vrot.slane %v107_v30, 1 }
  0x59   :  { %v109_v33 = vadd.f32 %v108_v32, %v107_v30 }
  0x5b   :  { %444 = vmatmul.mubr.f32.vlgmr.msra.gmra.mxu0 %v109_v33  ;;  %v302_v33 = vlaneseq }
 0x11b   :  { %v193_v36 = vpop.f32.mrf.mxu0 }
 0x11c   :  { %v194_v38 = vadd.f32 %v193_v36, %v126_v35  ;;  %v303_v35 = vshrl.u32 %v302_v33, 7 }
 0x11d   :  { %v445_v39 = vpop.f32.mrf.mxu0 }
 0x11e   :  { %v198_v41 = vsel %vm197_vm1, %v194_v38, 0.0  ;;  %v304_v36 = vsub.s32 0, %v303_v35 }
 0x11f   :  { %199 = vadd.xlane.f32.xlu0 %v198_v41 }
 0x1a8   :  { %v200_v42 = vpop.xlane.xlu0 %199 }
 0x1a9   :  { %v202_v44 = vmul.f32 0.03125, %v200_v42 }
 0x1ab   :  { %v203_v46 = vsub.f32 %v194_v38, %v202_v44 }
 0x1ad   :  { %v204_v48 = vmul.f32 %v203_v46, %v203_v46 }
 0x1af   :  { %v205_v50 = vsel %vm197_vm1, %v204_v48, 0.0 }
 0x1b0   :  { %206 = vadd.xlane.f32.xlu0 %v205_v50 }
 0x239   :  { %v207_v60 = vpop.xlane.xlu0 %206 }
 0x23a   :  { %v208_v62 = vmul.f32 0.03125, %v207_v60 }
 0x23c   :  { %v209_v1 = vadd.f32 1e-05, %v208_v62 }
 0x23e   :  { %463 = vrsqrt.f32 %v209_v1 }
 0x24b   :  { %v464_v3 = vpop.eup %463 }
 0x24c   :  { %v211_v11 = vmul.f32 %v464_v3, %v203_v46 }
 0x24e   :  { %v213_v17 = vmul.f32 %v212_v7, %v211_v11 }
 0x250   :  { %v215_v20 = vadd.f32 %v214_v14, %v213_v17 }
 0x252   :  { %v216_v23 = vmax.f32 %v215_v20, 0.0 }
 0x254   :  { %455 = vmatmul.mubr.msk.f32.vlgmr.msra.gmra.mxu1 %vm222_vm2, %v216_v23 }
 0x314   :  { %v292_v24 = vpop.f32.mrf.mxu1 }
 0x315   :  { %v293_v26 = vadd.f32 %v292_v24, %v221_v0 }
 0x316   :  { %v456_v27 = vpop.f32.mrf.mxu1 }
 0x317   :  { %v388_v29 = vmul.f32 -1.442695, %v293_v26 }
 0x319   :  { %465 = vpow2.f32 %v388_v29 }
 0x326   :  { %v466_v30 = vpop.eup %465 }
 0x327   :  { %v299_v32 = vadd.f32 1.0, %v466_v30 }
 0x329   :  { %467 = vrcp.f32 %v299_v32 }
 0x336   :  { %v468_v38 = vpop.eup %467 }
 0x337   :  { %v305_v39 = vrot.slane %v468_v38, %v304_v36 }
 0x339   :  { %v306_v41 = vmul.f32 %v305_v39, %v583_v5  ;;  %v307_v42 = vmul.f32 %v305_v39, %v585_v6  ;;  %v308_v44 = vmul.f32 %v305_v39, %v591_v8  ;;  %v309_v46 = vmul.f32 %v305_v39, %v595_v10 }
 0x33a   :  { %v310_v48 = vmul.f32 %v305_v39, %v602_v13  ;;  %v311_v50 = vmul.f32 %v305_v39, %v609_v16  ;;  %v312_v52 = vmul.f32 %v305_v39, %v616_v19  ;;  %v313_v54 = vmul.f32 %v305_v39, %v623_v22 }
 0x33b   :  { %v314_v56 = vmul.f32 %v305_v39, %v630_v25  ;;  %v315_v58 = vmul.f32 %v305_v39, %v637_v28  ;;  %v316_v5 = vmul.f32 %v305_v39, %v644_v31  ;;  %v317_v6 = vmul.f32 %v305_v39, %v651_v34  ;;  %338 = vst [vmem:[#allocation5] sm:$0xff] %v306_v41 }
 0x33c   :  { %339 = vst [vmem:[#allocation5 + $0x8] sm:$0xff] %v307_v42  ;;  %340 = vst [vmem:[#allocation5 + $0x10] sm:$0xff] %v308_v44  ;;  %v318_v8 = vmul.f32 %v305_v39, %v658_v37  ;;  %v319_v10 = vmul.f32 %v305_v39, %v665_v40  ;;  %v320_v13 = vmul.f32 %v305_v39, %v672_v43 }
 0x33d   :  { %341 = vst [vmem:[#allocation5 + $0x18] sm:$0xff] %v309_v46  ;;  %v321_v16 = vmul.f32 %v305_v39, %v676_v45  ;;  %342 = vst [vmem:[#allocation5 + $0x20] sm:$0xff] %v310_v48  ;;  %v322_v19 = vmul.f32 %v305_v39, %v679_v47  ;;  %v323_v22 = vmul.f32 %v305_v39, %v682_v49 }
 0x33e   :  { %343 = vst [vmem:[#allocation5 + $0x28] sm:$0xff] %v311_v50  ;;  %344 = vst [vmem:[#allocation5 + $0x30] sm:$0xff] %v312_v52  ;;  %v324_v25 = vmul.f32 %v305_v39, %v685_v51  ;;  %v325_v28 = vmul.f32 %v305_v39, %v688_v53  ;;  %v326_v31 = vmul.f32 %v305_v39, %v691_v55 }
 0x33f   :  { %345 = vst [vmem:[#allocation5 + $0x38] sm:$0xff] %v313_v54  ;;  %346 = vst [vmem:[#allocation5 + $0x40] sm:$0xff] %v314_v56  ;;  %v327_v34 = vmul.f32 %v305_v39, %v694_v57  ;;  %v328_v37 = vmul.f32 %v305_v39, %v697_v59  ;;  %v329_v40 = vmul.f32 %v305_v39, %v700_v61 }
 0x340   :  { %347 = vst [vmem:[#allocation5 + $0x48] sm:$0xff] %v315_v58  ;;  %348 = vst [vmem:[#allocation5 + $0x50] sm:$0xff] %v316_v5  ;;  %v330_v43 = vmul.f32 %v305_v39, %v703_v63  ;;  %v331_v45 = vmul.f32 %v305_v39, %v706_v2  ;;  %v332_v47 = vmul.f32 %v305_v39, %v709_v4 }
 0x341   :  { %349 = vst [vmem:[#allocation5 + $0x58] sm:$0xff] %v317_v6  ;;  %350 = vst [vmem:[#allocation5 + $0x60] sm:$0xff] %v318_v8  ;;  %v333_v49 = vmul.f32 %v305_v39, %v712_v9  ;;  %v334_v51 = vmul.f32 %v305_v39, %v715_v12  ;;  %v335_v53 = vmul.f32 %v305_v39, %v718_v15 }
 0x342   :  { %351 = vst [vmem:[#allocation5 + $0x68] sm:$0xff] %v319_v10  ;;  %352 = vst [vmem:[#allocation5 + $0x70] sm:$0xff] %v320_v13  ;;  %v336_v55 = vmul.f32 %v305_v39, %v721_v18  ;;  %v337_v57 = vmul.f32 %v305_v39, %v724_v21 }
 0x343   :  { %353 = vst [vmem:[#allocation5 + $0x78] sm:$0xff] %v321_v16  ;;  %354 = vst [vmem:[#allocation5 + $0x80] sm:$0xff] %v322_v19 }
 0x344   :  { %355 = vst [vmem:[#allocation5 + $0x88] sm:$0xff] %v323_v22  ;;  %356 = vst [vmem:[#allocation5 + $0x90] sm:$0xff] %v324_v25 }
 0x345   :  { %357 = vst [vmem:[#allocation5 + $0x98] sm:$0xff] %v325_v28  ;;  %358 = vst [vmem:[#allocation5 + $0xa0] sm:$0xff] %v326_v31 }
 0x346   :  { %359 = vst [vmem:[#allocation5 + $0xa8] sm:$0xff] %v327_v34  ;;  %360 = vst [vmem:[#allocation5 + $0xb0] sm:$0xff] %v328_v37 }
 0x347   :  { %361 = vst [vmem:[#allocation5 + $0xb8] sm:$0xff] %v329_v40  ;;  %362 = vst [vmem:[#allocation5 + $0xc0] sm:$0xff] %v330_v43 }
 0x348   :  { %363 = vst [vmem:[#allocation5 + $0xc8] sm:$0xff] %v331_v45  ;;  %364 = vst [vmem:[#allocation5 + $0xd0] sm:$0xff] %v332_v47 }
 0x349   :  { %365 = vst [vmem:[#allocation5 + $0xd8] sm:$0xff] %v333_v49  ;;  %366 = vst [vmem:[#allocation5 + $0xe0] sm:$0xff] %v334_v51 }
 0x34a   :  { %367 = vst [vmem:[#allocation5 + $0xe8] sm:$0xff] %v335_v53  ;;  %368 = vst [vmem:[#allocation5 + $0xf0] sm:$0xff] %v336_v55 }
 0x34b   :  { %369 = vst [vmem:[#allocation5 + $0xf8] sm:$0xff] %v337_v57 }
 0x34c   :  { %500 = shalt.err (!%p497_p9)
}
 0x34d   :  { %381 = dma.vmem_to_hbm [thread:$0]  %s376_s4, 4096, %s800_s7, [#allocation4], %s514_s27, %s514_s27, %s515_s28  }
 0x34e   :  { %511 = dma.done.wait [#allocation4], 4096  }
 0x34f   :  { %512 = vsyncadd [#allocation4], 4294963200 }
 0x350   :  { %385 = vsyncpa [#allocation3], 1 }
 0x351   :  { %386 = vsyncpa [#allocation4], 1 }

</bundles_post_ra>
